<compile_context>
chip_gen: v7x
topology: tpu7x:2x2x1
jax: 0.10.0
libtpu: 0.0.40
codegen_flags: <defaults>
</compile_context>

<pallas_src>
import functools

import jax
import jax.numpy as jnp
from jax.experimental import pallas as pl
from jax.experimental.pallas import tpu as pltpu

EPS = 1e-5


def bn_classifier_kernel(x_ref, gamma_ref, beta_ref, w_ref,
                         feat_ref, score_ref, fbuf_ref):
    """One grid step = one TILE_C-wide slab of the classifier output.

    x_ref / gamma_ref / beta_ref / feat_ref map to the same block for every
    grid index, so they are DMAed once and stay resident in VMEM;
    w_ref / score_ref stream tile-by-tile (double-buffered by BlockSpec).
    """
    j = pl.program_id(0)

    @pl.when(j == 0)
    def _():
        x = x_ref[...]                                               # [N, D] f32
        mean = jnp.mean(x, axis=0, keepdims=True)                    # [1, D]
        centered = x - mean                                          # [N, D]
        var = jnp.mean(centered * centered, axis=0, keepdims=True)   # biased var
        scale = jax.lax.rsqrt(var + EPS) * gamma_ref[...]            # [1, D]
        feature = centered * scale + beta_ref[...]                   # [N, D]
        feat_ref[...] = feature.astype(feat_ref.dtype)               # resident out
        fbuf_ref[...] = feature.astype(fbuf_ref.dtype)               # bf16 MXU copy

    # Classifier slab: [N, D] bf16 @ [D, TILE_C] bf16 -> f32 accumulation.
    score_ref[...] = jnp.dot(
        fbuf_ref[...], w_ref[...], preferred_element_type=jnp.float32
    ).astype(score_ref.dtype)


@functools.partial(jax.jit, static_argnames=("tile_c",))
def bn_classifier(x, gamma, beta, w, *, tile_c=512):
    """HOReID BNClassifier forward.

    x:     [N, D] float32   (batch, in_dim)
    gamma: [D]    float32   (bn.weight)
    beta:  [D]    float32   (bn.bias, frozen at 0 in the module)
    w:     [C, D] float32   (classifier.weight, torch Linear layout)
    returns (feature [N, D], cls_score [N, C])
    """
    N, D = x.shape
    C = w.shape[0]

    # Lane-dense class tiling: TILE_C is a multiple of 128; C is padded with zero
    # columns to n_steps * TILE_C (sliced off after the call). TILE_C is shrunk to
    # the smallest multiple of 128 covering the padded C in n_steps steps so the
    # zero-padding waste stays minimal (e.g. C=702 -> TILE_C=384, C_pad=768).
    tile_c = max(128, (int(tile_c) // 128) * 128)
    c128 = pl.cdiv(C, 128) * 128
    n_steps = pl.cdiv(c128, tile_c)
    tile_c = pl.cdiv(c128, n_steps * 128) * 128
    c_pad = n_steps * tile_c

    w_t = jnp.zeros((D, c_pad), dtype=jnp.bfloat16)
    w_t = w_t.at[:, :C].set(w.T.astype(jnp.bfloat16))            # [D, C_pad] bf16

    gamma2 = gamma.reshape(1, D).astype(jnp.float32)
    beta2 = beta.reshape(1, D).astype(jnp.float32)

    cost = pl.CostEstimate(
        flops=2 * N * D * c_pad + 10 * N * D,
        transcendentals=D,                                       # rsqrt per feature
        bytes_accessed=(4 * N * D                                # x in
                        + 2 * D * c_pad                          # bf16 weight stream
                        + 4 * N * D                              # feature out
                        + 4 * N * c_pad                          # score out
                        + 8 * D),                                # gamma + beta
    )

    feat, score = pl.pallas_call(
        bn_classifier_kernel,
        out_shape=(
            jax.ShapeDtypeStruct((N, D), x.dtype),
            jax.ShapeDtypeStruct((N, c_pad), x.dtype),
        ),
        grid_spec=pltpu.PrefetchScalarGridSpec(
            num_scalar_prefetch=0,
            grid=(n_steps,),
            in_specs=[
                pl.BlockSpec((N, D), lambda j: (0, 0)),          # x (resident)
                pl.BlockSpec((1, D), lambda j: (0, 0)),          # gamma (resident)
                pl.BlockSpec((1, D), lambda j: (0, 0)),          # beta (resident)
                pl.BlockSpec((D, tile_c), lambda j: (0, j)),     # weight stream
            ],
            out_specs=(
                pl.BlockSpec((N, D), lambda j: (0, 0)),          # feature (resident)
                pl.BlockSpec((N, tile_c), lambda j: (0, j)),     # score stream
            ),
            scratch_shapes=[pltpu.VMEM((N, D), jnp.bfloat16)],   # cached bf16 feature
        ),
        # Feature scratch/output produced at j == 0 and reused -> sequential axis.
        compiler_params=pltpu.CompilerParams(
            dimension_semantics=("arbitrary",),
        ),
        cost_estimate=cost,
    )(x, gamma2, beta2, w_t)

    return feat, score[:, :C]


def reference(x, gamma, beta, w):
    mean = jnp.mean(x, axis=0, keepdims=True)
    var = jnp.mean((x - mean) ** 2, axis=0, keepdims=True)
    feat = (x - mean) / jnp.sqrt(var + EPS) * gamma[None, :] + beta[None, :]
    # Match the kernel's bf16-operand / f32-accumulate classifier matmul.
    score = jnp.dot(feat.astype(jnp.bfloat16), w.T.astype(jnp.bfloat16),
                    preferred_element_type=jnp.float32)
    return feat, score


if __name__ == "__main__":
    key = jax.random.PRNGKey(0)
    # Small shapes that still exercise class-dim tiling + lane padding:
    # C=200 -> padded to 256, two 128-wide grid steps.
    N, in_dim, class_num = 8, 256, 200

    kx, kw = jax.random.split(key)
    x = jax.random.normal(kx, (N, in_dim), dtype=jnp.float32)

    # Module init: weights_init_kaiming on BN -> weight=1, bias=0 (bias frozen);
    # weights_init_classifier -> normal(std=0.001), no bias.
    gamma = jnp.ones((in_dim,), dtype=jnp.float32)
    beta = jnp.zeros((in_dim,), dtype=jnp.float32)
    w = 0.001 * jax.random.normal(kw, (class_num, in_dim), dtype=jnp.float32)

    feat, score = bn_classifier(x, gamma, beta, w, tile_c=128)
    jax.block_until_ready((feat, score))

    feat_ref, score_ref = reference(x, gamma, beta, w)
    assert feat.shape == (N, in_dim) and score.shape == (N, class_num)
    assert jnp.allclose(feat, feat_ref, atol=1e-4, rtol=1e-4)
    assert jnp.allclose(score, score_ref, atol=1e-4, rtol=1e-2)  # bf16 weights

    print("KERNEL_OK")
</pallas_src>

<mosaic_0001>
module attributes {stable_mosaic.version = 11 : i64} {
  func.func @bn_classifier_kernel(%arg0: i32, %arg1: memref<8x256xf32, #tpu.memory_space<vmem>>, %arg2: memref<1x256xf32, #tpu.memory_space<vmem>>, %arg3: memref<1x256xf32, #tpu.memory_space<vmem>>, %arg4: memref<256x128xbf16, #tpu.memory_space<vmem>>, %arg5: memref<8x256xf32, #tpu.memory_space<vmem>>, %arg6: memref<8x128xf32, #tpu.memory_space<vmem>>, %arg7: memref<8x256xbf16, #tpu.memory_space<vmem>>) attributes {dimension_semantics = [#tpu.dimension_semantics<arbitrary>], iteration_bounds = array<i64: 2>, scalar_prefetch = 0 : i64, scratch_operands = 1 : i64, tpu.core_type = #tpu.core_type<tc>, window_params = [{pipeline_mode = #tpu.pipeline_mode<synchronous>, transform_indices = @transform_0, window_bounds = array<i64: 8, 256>}, {pipeline_mode = #tpu.pipeline_mode<synchronous>, transform_indices = @transform_1, window_bounds = array<i64: 1, 256>}, {pipeline_mode = #tpu.pipeline_mode<synchronous>, transform_indices = @transform_2, window_bounds = array<i64: 1, 256>}, {transform_indices = @transform_3, window_bounds = array<i64: 256, 128>}, {pipeline_mode = #tpu.pipeline_mode<synchronous>, transform_indices = @transform_4, window_bounds = array<i64: 8, 256>}, {transform_indices = @transform_5, window_bounds = array<i64: 8, 128>}]} {
    %c0_i32 = arith.constant 0 : i32
    %0 = arith.cmpi eq, %arg0, %c0_i32 : i32
    %1 = arith.extui %0 : i1 to i32
    %c0_i32_0 = arith.constant 0 : i32
    %2 = arith.cmpi ne, %1, %c0_i32_0 : i32
    scf.if %2 {
      %c0_6 = arith.constant 0 : index
      %c0_7 = arith.constant 0 : index
      %7 = vector.load %arg1[%c0_6, %c0_7] : memref<8x256xf32, #tpu.memory_space<vmem>>, vector<8x256xf32>
      %cst_8 = arith.constant dense<0.000000e+00> : vector<256xf32>
      %8 = vector.multi_reduction <add>, %7, %cst_8 [0] : vector<8x256xf32> to vector<256xf32>
      %9 = vector.shape_cast %8 : vector<256xf32> to vector<1x256xf32>
      %cst_9 = arith.constant 8.000000e+00 : f32
      %10 = vector.broadcast %cst_9 : f32 to vector<1x256xf32>
      %11 = arith.divf %9, %10 : vector<1x256xf32>
      %12 = vector.broadcast %11 : vector<1x256xf32> to vector<8x256xf32>
      %13 = arith.subf %7, %12 : vector<8x256xf32>
      %14 = arith.mulf %13, %13 : vector<8x256xf32>
      %cst_10 = arith.constant dense<0.000000e+00> : vector<256xf32>
      %15 = vector.multi_reduction <add>, %14, %cst_10 [0] : vector<8x256xf32> to vector<256xf32>
      %16 = vector.shape_cast %15 : vector<256xf32> to vector<1x256xf32>
      %cst_11 = arith.constant 8.000000e+00 : f32
      %17 = vector.broadcast %cst_11 : f32 to vector<1x256xf32>
      %18 = arith.divf %16, %17 : vector<1x256xf32>
      %cst_12 = arith.constant 9.99999974E-6 : f32
      %19 = vector.broadcast %cst_12 : f32 to vector<1x256xf32>
      %20 = arith.addf %18, %19 : vector<1x256xf32>
      %21 = math.rsqrt %20 : vector<1x256xf32>
      %c0_13 = arith.constant 0 : index
      %c0_14 = arith.constant 0 : index
      %22 = vector.load %arg2[%c0_13, %c0_14] : memref<1x256xf32, #tpu.memory_space<vmem>>, vector<1x256xf32>
      %23 = arith.mulf %21, %22 : vector<1x256xf32>
      %24 = vector.broadcast %23 : vector<1x256xf32> to vector<8x256xf32>
      %25 = arith.mulf %13, %24 : vector<8x256xf32>
      %c0_15 = arith.constant 0 : index
      %c0_16 = arith.constant 0 : index
      %26 = vector.load %arg3[%c0_15, %c0_16] : memref<1x256xf32, #tpu.memory_space<vmem>>, vector<1x256xf32>
      %27 = vector.broadcast %26 : vector<1x256xf32> to vector<8x256xf32>
      %28 = arith.addf %25, %27 : vector<8x256xf32>
      %c0_17 = arith.constant 0 : index
      %c0_18 = arith.constant 0 : index
      %29 = vector.load %arg5[%c0_17, %c0_18] : memref<8x256xf32, #tpu.memory_space<vmem>>, vector<8x256xf32>
      tpu.vector_store %arg5[%c0_17, %c0_18], %28 {strides = array<i32>} : memref<8x256xf32, #tpu.memory_space<vmem>>, vector<8x256xf32>,
      %30 = arith.truncf %28 : vector<8x256xf32> to vector<8x256xbf16>
      %c0_19 = arith.constant 0 : index
      %c0_20 = arith.constant 0 : index
      %31 = vector.load %arg7[%c0_19, %c0_20] : memref<8x256xbf16, #tpu.memory_space<vmem>>, vector<8x256xbf16>
      tpu.vector_store %arg7[%c0_19, %c0_20], %30 {strides = array<i32>} : memref<8x256xbf16, #tpu.memory_space<vmem>>, vector<8x256xbf16>,
    } else {
    }
    %c0 = arith.constant 0 : index
    %c0_1 = arith.constant 0 : index
    %3 = vector.load %arg7[%c0, %c0_1] : memref<8x256xbf16, #tpu.memory_space<vmem>>, vector<8x256xbf16>
    %c0_2 = arith.constant 0 : index
    %c0_3 = arith.constant 0 : index
    %4 = vector.load %arg4[%c0_2, %c0_3] : memref<256x128xbf16, #tpu.memory_space<vmem>>, vector<256x128xbf16>
    %cst = arith.constant dense<0.000000e+00> : vector<8x128xf32>
    %5 = tpu.matmul %3, %4, %cst {dimension_numbers = #tpu.dot_dimension_numbers<[1], [0], [0], [1], [0, 0, 1, 1], [], []>} : vector<8x256xbf16>, vector<256x128xbf16>, vector<8x128xf32> -> vector<8x128xf32>
    %c0_4 = arith.constant 0 : index
    %c0_5 = arith.constant 0 : index
    %6 = vector.load %arg6[%c0_4, %c0_5] : memref<8x128xf32, #tpu.memory_space<vmem>>, vector<8x128xf32>
    tpu.vector_store %arg6[%c0_4, %c0_5], %5 {strides = array<i32>} : memref<8x128xf32, #tpu.memory_space<vmem>>, vector<8x128xf32>,
    return
  }
  func.func @transform_0(%arg0: i32) -> (i32, i32) {
    %c0_i32 = arith.constant 0 : i32
    %c0_i32_0 = arith.constant 0 : i32
    %c0_i32_1 = arith.constant 0 : i32
    return %c0_i32, %c0_i32_0 : i32, i32
  }
  func.func @transform_1(%arg0: i32) -> (i32, i32) {
    %c0_i32 = arith.constant 0 : i32
    %c0_i32_0 = arith.constant 0 : i32
    %c0_i32_1 = arith.constant 0 : i32
    return %c0_i32, %c0_i32_0 : i32, i32
  }
  func.func @transform_2(%arg0: i32) -> (i32, i32) {
    %c0_i32 = arith.constant 0 : i32
    %c0_i32_0 = arith.constant 0 : i32
    %c0_i32_1 = arith.constant 0 : i32
    return %c0_i32, %c0_i32_0 : i32, i32
  }
  func.func @transform_3(%arg0: i32) -> (i32, i32) {
    %c0_i32 = arith.constant 0 : i32
    %c0_i32_0 = arith.constant 0 : i32
    return %c0_i32, %arg0 : i32, i32
  }
  func.func @transform_4(%arg0: i32) -> (i32, i32) {
    %c0_i32 = arith.constant 0 : i32
    %c0_i32_0 = arith.constant 0 : i32
    %c0_i32_1 = arith.constant 0 : i32
    return %c0_i32, %c0_i32_0 : i32, i32
  }
  func.func @transform_5(%arg0: i32) -> (i32, i32) {
    %c0_i32 = arith.constant 0 : i32
    %c0_i32_0 = arith.constant 0 : i32
    return %c0_i32, %arg0 : i32, i32
  }
}

</mosaic_0001>

<bundles_post_ra>
// kernel: bn_classifier.1
= control target key start
LH: loop header
LB: loop body
LE: loop exit
PB: predicated region body
PF: predicated region fallthrough
CT: control target
= control target key end

     0   :  { %11 = vsyncpa [#allocation5], 0  ;;  %s1248_s0 = inlined_call_operand.vmem [shape: f32[8,256], index: 0, kind: input, shape index: {}]   ;;  %s1249_s1 = inlined_call_operand.vmem [shape: f32[1,256], index: 1, kind: input, shape index: {}]   ;;  %s1250_s2 = inlined_call_operand.vmem [shape: f32[1,256], index: 2, kind: input, shape index: {}]   ;;  %s1251_s3 = inlined_call_operand.vmem [shape: bf16[256,256], index: 3, kind: input, shape index: {}]   ;;  %s1252_s4 = inlined_call_operand.hbm [shape: f32[8,256], index: 4, kind: output, shape index: {0}]   ;;  %s1253_s5 = inlined_call_operand.hbm [shape: f32[8,256], index: 5, kind: output, shape index: {1}]  }
   0x1   :  { %12 = vsyncpa [#allocation7], 0 }
   0x2   :  { %14 = vsyncpa [#allocation7 + $0x1], 0  ;;  %s1011_s18 = smov 0   ;;  %s1013_s19 = smov 0  }
   0x3   :  { %s1015_s20 = smov 0   ;;  %s1017_s21 = smov 0  }
   0x4 LB: > { %s1032_s22 = sadd.s32 4294967295, %s977_s21   ;;  %s760_s23 = sadd.s32 4294967294, %s977_s21   ;;  %s977_s21 = sphi %s1017_s21, %s1259_s21   ;;  %s973_s20 = sphi %s1015_s20, %s1258_s20   ;;  %s969_s19 = sphi %s1013_s19, %s1257_s19   ;;  %s965_s18 = sphi %s1011_s18, %s1256_s18  }
   0x5   : > { %s1036_s24 = sadd.s32 1, %s977_s21   ;;  %s90_s25 = sadd.s32 1, %s973_s20 }
   0x6   : > { %s87_s26 = ssub.s32 %s977_s21, %s1036_s24  ;;  %p97_p0 = scmp.ne.s32.totalorder %s973_s20, %s969_s19 }
   0x7   : > { %p88_p1 = scmp.eq.s32.totalorder %s87_s26, 0  ;;  %p98_p2 = scmp.eq.s32.totalorder %s977_s21, 0 }
   0x8   : > { %p148_p3 = scmp.eq.s32.totalorder %s1032_s22, 1  ;;  %p153_p4 = scmp.ne.s32.totalorder %s969_s19, %s965_s18 }
   0x9   : > { %s1048_s27 = scalar_select %p88_p1, %s973_s20, %s90_s25  }
   0xa   : > { %p99_p5 = por %p98_p2, %p97_p0  ;;  %p1052_p6 = por %p148_p3, %p97_p0 }
   0xb   : > { %p154_p7 = scmp.eq.s32.totalorder %s760_s23, 1  ;;  %p762_p9 = scmp.ge.s32.totalorder %s977_s21, 2 }
   0xd   : > { %p1056_p8 = por %p154_p7, %p153_p4  ;;  %179 = sbr.rel (%p762_p9) target bundleno = 45 (0x2d), region = 28 }
  0x14   : > { %182 = sbr.rel (!%p99_p5) target bundleno = 45 (0x2d), region = 32  ;;  %s184_s30 = sand.u32 (%p99_p5), 1, %s973_s20  }
  0x15   : > { %s764_s6 = sshll.u32 (%p99_p5), %s977_s21, 2  ;;  %s763_s7 = sshll.u32 (%p99_p5), %s184_s30, 7 }
  0x16   : > { %s1068_s10 = scalar_lea.vmem (%p99_p5), %s1251_s3, %s764_s6  ;;  %s1072_s11 = scalar_lea.vmem (%p99_p5), [#allocation3], %s763_s7 }
  0x17   : > { %v204_v0 = vld [vmem:[%s1068_s10] sm:$0xf] (%p99_p5)  ;;  %v206_v1 = vld [vmem:[%s1068_s10 + $0x8] sm:$0xf] (%p99_p5)  ;;  %v208_v2 = vld [vmem:[%s1068_s10 + $0x10] sm:$0xf] (%p99_p5) }
  0x18   : > { %205 = vst [vmem:[%s1072_s11] sm:$0xf] (%p99_p5), %v204_v0  ;;  %207 = vst [vmem:[%s1072_s11 + $0x4] sm:$0xf] (%p99_p5), %v206_v1  ;;  %v210_v3 = vld [vmem:[%s1068_s10 + $0x18] sm:$0xf] (%p99_p5) }
  0x19   : > { %v212_v4 = vld [vmem:[%s1068_s10 + $0x20] sm:$0xf] (%p99_p5)  ;;  %209 = vst [vmem:[%s1072_s11 + $0x8] sm:$0xf] (%p99_p5), %v208_v2  ;;  %211 = vst [vmem:[%s1072_s11 + $0xc] sm:$0xf] (%p99_p5), %v210_v3 }
  0x1a   : > { %213 = vst [vmem:[%s1072_s11 + $0x10] sm:$0xf] (%p99_p5), %v212_v4  ;;  %v214_v5 = vld [vmem:[%s1068_s10 + $0x28] sm:$0xf] (%p99_p5)  ;;  %v216_v6 = vld [vmem:[%s1068_s10 + $0x30] sm:$0xf] (%p99_p5) }
  0x1b   : > { %v218_v7 = vld [vmem:[%s1068_s10 + $0x38] sm:$0xf]  ;;  %215 = vst [vmem:[%s1072_s11 + $0x14] sm:$0xf] %v214_v5  ;;  %217 = vst [vmem:[%s1072_s11 + $0x18] sm:$0xf] %v216_v6 }
  0x1c   : > { %219 = vst [vmem:[%s1072_s11 + $0x1c] sm:$0xf] %v218_v7  ;;  %v220_v8 = vld [vmem:[%s1068_s10 + $0x40] sm:$0xf]  ;;  %v222_v9 = vld [vmem:[%s1068_s10 + $0x48] sm:$0xf] }
  0x1d   : > { %v224_v10 = vld [vmem:[%s1068_s10 + $0x50] sm:$0xf]  ;;  %221 = vst [vmem:[%s1072_s11 + $0x20] sm:$0xf] %v220_v8  ;;  %223 = vst [vmem:[%s1072_s11 + $0x24] sm:$0xf] %v222_v9 }
  0x1e   : > { %225 = vst [vmem:[%s1072_s11 + $0x28] sm:$0xf] %v224_v10  ;;  %v226_v11 = vld [vmem:[%s1068_s10 + $0x58] sm:$0xf]  ;;  %v228_v12 = vld [vmem:[%s1068_s10 + $0x60] sm:$0xf] }
  0x1f   : > { %v230_v13 = vld [vmem:[%s1068_s10 + $0x68] sm:$0xf]  ;;  %227 = vst [vmem:[%s1072_s11 + $0x2c] sm:$0xf] %v226_v11  ;;  %229 = vst [vmem:[%s1072_s11 + $0x30] sm:$0xf] %v228_v12 }
  0x20   : > { %231 = vst [vmem:[%s1072_s11 + $0x34] sm:$0xf] %v230_v13  ;;  %v232_v14 = vld [vmem:[%s1068_s10 + $0x70] sm:$0xf]  ;;  %v234_v15 = vld [vmem:[%s1068_s10 + $0x78] sm:$0xf] }
  0x21   : > { %v236_v16 = vld [vmem:[%s1068_s10 + $0x80] sm:$0xf]  ;;  %233 = vst [vmem:[%s1072_s11 + $0x38] sm:$0xf] %v232_v14  ;;  %235 = vst [vmem:[%s1072_s11 + $0x3c] sm:$0xf] %v234_v15 }
  0x22   : > { %237 = vst [vmem:[%s1072_s11 + $0x40] sm:$0xf] %v236_v16  ;;  %v238_v17 = vld [vmem:[%s1068_s10 + $0x88] sm:$0xf]  ;;  %v240_v18 = vld [vmem:[%s1068_s10 + $0x90] sm:$0xf] }
  0x23   : > { %v242_v19 = vld [vmem:[%s1068_s10 + $0x98] sm:$0xf]  ;;  %239 = vst [vmem:[%s1072_s11 + $0x44] sm:$0xf] %v238_v17  ;;  %241 = vst [vmem:[%s1072_s11 + $0x48] sm:$0xf] %v240_v18 }
  0x24   : > { %243 = vst [vmem:[%s1072_s11 + $0x4c] sm:$0xf] %v242_v19  ;;  %v244_v20 = vld [vmem:[%s1068_s10 + $0xa0] sm:$0xf]  ;;  %v246_v21 = vld [vmem:[%s1068_s10 + $0xa8] sm:$0xf] }
  0x25   : > { %v248_v22 = vld [vmem:[%s1068_s10 + $0xb0] sm:$0xf]  ;;  %245 = vst [vmem:[%s1072_s11 + $0x50] sm:$0xf] %v244_v20  ;;  %247 = vst [vmem:[%s1072_s11 + $0x54] sm:$0xf] %v246_v21 }
  0x26   : > { %249 = vst [vmem:[%s1072_s11 + $0x58] sm:$0xf] %v248_v22  ;;  %v250_v23 = vld [vmem:[%s1068_s10 + $0xb8] sm:$0xf]  ;;  %v252_v24 = vld [vmem:[%s1068_s10 + $0xc0] sm:$0xf] }
  0x27   : > { %v254_v25 = vld [vmem:[%s1068_s10 + $0xc8] sm:$0xf]  ;;  %251 = vst [vmem:[%s1072_s11 + $0x5c] sm:$0xf] %v250_v23  ;;  %253 = vst [vmem:[%s1072_s11 + $0x60] sm:$0xf] %v252_v24 }
  0x28   : > { %255 = vst [vmem:[%s1072_s11 + $0x64] sm:$0xf] %v254_v25  ;;  %v256_v26 = vld [vmem:[%s1068_s10 + $0xd0] sm:$0xf]  ;;  %v258_v27 = vld [vmem:[%s1068_s10 + $0xd8] sm:$0xf] }
  0x29   : > { %v260_v28 = vld [vmem:[%s1068_s10 + $0xe0] sm:$0xf]  ;;  %257 = vst [vmem:[%s1072_s11 + $0x68] sm:$0xf] %v256_v26  ;;  %259 = vst [vmem:[%s1072_s11 + $0x6c] sm:$0xf] %v258_v27 }
  0x2a   : > { %261 = vst [vmem:[%s1072_s11 + $0x70] sm:$0xf] %v260_v28  ;;  %v262_v29 = vld [vmem:[%s1068_s10 + $0xe8] sm:$0xf]  ;;  %v264_v30 = vld [vmem:[%s1068_s10 + $0xf0] sm:$0xf] }
  0x2b   : > { %v266_v31 = vld [vmem:[%s1068_s10 + $0xf8] sm:$0xf]  ;;  %263 = vst [vmem:[%s1072_s11 + $0x74] sm:$0xf] %v262_v29  ;;  %265 = vst [vmem:[%s1072_s11 + $0x78] sm:$0xf] %v264_v30 }
  0x2c   : > { %267 = vst [vmem:[%s1072_s11 + $0x7c] sm:$0xf] %v266_v31 }
  0x2d PF: > { %p765_p10 = scmp.ge.s32.totalorder %s977_s21, 1  ;;  %p353_p11 = scmp.lt.s32.totalorder %s977_s21, 3 }
  0x2f   : > { %p354_p12 = pnand %p765_p10, %p353_p11 }
  0x30   : > { %s1139_s12 = sand.u32 (!%p354_p12), 1, %s969_s19   ;;  %p768_p13 = scmp.ne.s32.totalorder (!%p354_p12), %s1032_s22, 0 }
  0x31   : > { %357 = sbr.rel (%p354_p12) target bundleno = 378 (0x17a), region = 73  ;;  %s766_s13 = sshll.u32 (!%p354_p12), %s1139_s12, 7 }
  0x32   : > { %s767_s14 = sshll.u32 (!%p354_p12), %s1139_s12, 3  ;;  %s1143_s15 = scalar_lea.vmem (!%p354_p12), [#allocation3], %s766_s13 }
  0x33   : > { %s1145_s16 = scalar_lea.vmem (!%p354_p12), [#allocation6], %s767_s14 }
  0x38   : > { %391 = sbr.rel (%p768_p13) target bundleno = 114 (0x72), region = 81  ;;  %v392_v32 = vld [vmem:[%s1248_s0] sm:$0xff] (!%p768_p13)  ;;  %v393_v34 = vld [vmem:[%s1248_s0 + $0x8] sm:$0xff] (!%p768_p13)  ;;  %v433_v63 = vlaneseq (!%p768_p13) }
  0x39   : > { %v394_v33 = vrot.slane (!%p768_p13), %v392_v32, 4  ;;  %v400_v35 = vrot.slane (!%p768_p13), %v393_v34, 4  ;;  %v431_v7 = vld [vmem:[%s1249_s1] sm:$0x3] (!%p768_p13) }
  0x3a   : > { %v434_v4 = vshrl.u32 (!%p768_p13), %v433_v63, 7  ;;  %v455_v12 = vld [vmem:[%s1250_s2] sm:$0x3] (!%p768_p13) }
  0x3b   : > { %v395_v36 = vadd.f32 (!%p768_p13), %v394_v33, %v392_v32  ;;  %v401_v37 = vadd.f32 (!%p768_p13), %v400_v35, %v393_v34 }
  0x3c   : > { %v435_v6 = vsub.s32 (!%p768_p13), 0, %v434_v4  ;;  %v439_v8 = vsub.s32 (!%p768_p13), 1, %v434_v4 }
  0x3d   : > { %v396_v38 = vrot.slane (!%p768_p13), %v395_v36, 2  ;;  %v402_v39 = vrot.slane (!%p768_p13), %v401_v37, 2 }
  0x3e   : > { %v436_v9 = vrot.slane (!%p768_p13), %v431_v7, %v435_v6  ;;  %v440_v10 = vrot.slane (!%p768_p13), %v431_v7, %v439_v8  ;;  %v460_v17 = vrot.slane (!%p768_p13), %v455_v12, %v435_v6  ;;  %v464_v19 = vrot.slane (!%p768_p13), %v455_v12, %v439_v8 }
  0x3f   : > { %v397_v40 = vadd.f32 %v396_v38, %v395_v36  ;;  %v403_v41 = vadd.f32 %v402_v39, %v401_v37 }
  0x41   : > { %v398_v42 = vrot.slane %v397_v40, 1  ;;  %v404_v43 = vrot.slane %v403_v41, 1 }
  0x43   : > { %v399_v44 = vadd.f32 %v398_v42, %v397_v40  ;;  %v405_v45 = vadd.f32 %v404_v43, %v403_v41 }
  0x45   : > { %v407_v46 = vmul.f32 0.125, %v399_v44  ;;  %v408_v47 = vmul.f32 0.125, %v405_v45 }
  0x47   : > { %v409_v48 = vsub.f32 %v392_v32, %v407_v46  ;;  %v410_v49 = vsub.f32 %v393_v34, %v408_v47 }
  0x49   : > { %v411_v50 = vmul.f32 %v409_v48, %v409_v48  ;;  %v412_v51 = vmul.f32 %v410_v49, %v410_v49 }
  0x4b   : > { %v413_v52 = vrot.slane %v411_v50, 4  ;;  %v419_v53 = vrot.slane %v412_v51, 4 }
  0x4d   : > { %v414_v54 = vadd.f32 %v413_v52, %v411_v50  ;;  %v420_v55 = vadd.f32 %v419_v53, %v412_v51 }
  0x4f   : > { %v415_v56 = vrot.slane %v414_v54, 2  ;;  %v421_v57 = vrot.slane %v420_v55, 2 }
  0x51   : > { %v416_v58 = vadd.f32 %v415_v56, %v414_v54  ;;  %v422_v59 = vadd.f32 %v421_v57, %v420_v55 }
  0x53   : > { %v417_v60 = vrot.slane %v416_v58, 1  ;;  %v423_v61 = vrot.slane %v422_v59, 1 }
  0x55   : > { %v418_v62 = vadd.f32 %v417_v60, %v416_v58  ;;  %v424_v0 = vadd.f32 %v423_v61, %v422_v59 }
  0x57   : > { %v425_v1 = vmul.f32 0.125, %v418_v62  ;;  %v426_v2 = vmul.f32 0.125, %v424_v0 }
  0x59   : > { %v427_v3 = vadd.f32 1e-05, %v425_v1  ;;  %v428_v5 = vadd.f32 1e-05, %v426_v2 }
  0x5b   : > { %863 = vrsqrt.f32 %v427_v3 }
  0x5c   : > { %865 = vrsqrt.f32 %v428_v5 }
  0x65   : > { %v864_v11 = vpop.eup %863 }
  0x66   : > { %v866_v13 = vpop.eup %865  ;;  %v443_v14 = vmul.f32 %v864_v11, %v436_v9 }
  0x67   : > { %v444_v15 = vmul.f32 %v866_v13, %v440_v10 }
  0x68   : > { %v448_v16 = vrot.slane %v443_v14, %v435_v6 }
  0x69   : > { %v452_v18 = vrot.slane %v444_v15, %v435_v6 }
  0x6a   : > { %v453_v20 = vmul.f32 %v448_v16, %v409_v48 }
  0x6b   : > { %v454_v21 = vmul.f32 %v452_v18, %v410_v49 }
  0x6c   : > { %v467_v22 = vadd.f32 %v460_v17, %v453_v20 }
  0x6d   : > { %v468_v23 = vadd.f32 %v464_v19, %v454_v21 }
  0x6e   : > { %469 = vst [vmem:[#allocation4] sm:$0xff] %v467_v22 }
  0x6f   : > { %470 = vst [vmem:[#allocation4 + $0x8] sm:$0xff] %v468_v23  ;;  %v794_v24 = vpack.c.bf16 %v468_v23, %v467_v22 }
  0x71   : > { %479 = vst [vmem:[#allocation2] sm:$0xff] %v794_v24 }
  0x72 PF: > { %v867_v25 = vld [vmem:[%s1143_s15 + $0x40] sm:$0xff]   ;;  %v869_v27 = vld [vmem:[%s1143_s15 + $0x48] sm:$0xff]   ;;  %v871_v29 = vld [vmem:[%s1143_s15 + $0x50] sm:$0xff]   ;;  %s979_s9 = smov [#allocation4]  }
  0x73   : > { %v868_v26 = vld [vmem:[%s1143_s15] sm:$0xff]   ;;  %795 = vmatprep.subr.bf16.mxu0 %v867_v25  ;;  %v870_v28 = vld [vmem:[%s1143_s15 + $0x8] sm:$0xff]   ;;  %v872_v30 = vld [vmem:[%s1143_s15 + $0x10] sm:$0xff]   ;;  %s669_s10 = sshll.u32 %s979_s9, 4  ;;  %s670_s10 = int_to_ptr.vmem [resolvable:$true] %s669_s10 }
  0x74   : > { %796 = vmatpush3.bf16.msra.mxu0 %v868_v26  ;;  %v873_v31 = vld [vmem:[%s1143_s15 + $0x58] sm:$0xff]   ;;  %v875_v33 = vld [vmem:[%s1143_s15 + $0x60] sm:$0xff]   ;;  %v877_v35 = vld [vmem:[%s1143_s15 + $0x68] sm:$0xff]   ;;  %s885_s11 = scalar_lea.vmem %s670_s10, 256  ;;  %p892_p4 = scmp.lt.s32.totalorder %s670_s10, %s670_s10 }
  0x75   : > { %797 = vmatprep.subr.bf16.mxu0 %v869_v27  ;;  %v874_v32 = vld [vmem:[%s1143_s15 + $0x18] sm:$0xff]   ;;  %v876_v34 = vld [vmem:[%s1143_s15 + $0x20] sm:$0xff]   ;;  %v878_v38 = vld [vmem:[%s1143_s15 + $0x28] sm:$0xff]   ;;  %p886_p0 = scmp.ne.s32.totalorder %s670_s10, %s885_s11  ;;  %p893_p5 = scmp.lt.s32.totalorder %s885_s11, %s885_s11 }
  0x76   : > { %v879_v39 = vld [vmem:[%s1143_s15 + $0x70] sm:$0xff]   ;;  %v881_v41 = vld [vmem:[%s1143_s15 + $0x78] sm:$0xff]  }
  0x77   : > { %v880_v40 = vld [vmem:[%s1143_s15 + $0x30] sm:$0xff]   ;;  %v882_v42 = vld [vmem:[%s1143_s15 + $0x38] sm:$0xff]   ;;  %p887_p1 = pnand %p886_p0, %p148_p3  ;;  %p894_p7 = por %p893_p5, %p892_p4 }
  0x78   : > { %798 = vmatpush3.bf16.msra.mxu0 %v870_v28  ;;  %v480_v36 = vld [vmem:[#allocation2] sm:$0xff] }
  0x79   : > { %799 = vmatprep.subr.bf16.mxu0 %v871_v29  ;;  %v771_v37 = vcombine.high %v480_v36, %v480_v36  ;;  %v770_v43 = vcombine.low %v480_v36, %v480_v36  ;;  %p888_p2 = pneg %p887_p1 }
  0x7b   : > { %648 = vmatprep.mubr.bf16.mxu0 %v771_v37  ;;  %p895_p10 = pnand %p894_p7, %p888_p2 }
  0x7c   : > { %800 = vmatpush3.bf16.msra.mxu0 %v872_v30 }
  0x7d   : > { %801 = vmatprep.subr.bf16.mxu0 %v873_v31 }
  0x80   : > { %802 = vmatpush3.bf16.msra.mxu0 %v874_v32 }
  0x81   : > { %803 = vmatprep.subr.bf16.mxu0 %v875_v33 }
  0x84   : > { %804 = vmatpush3.bf16.msra.mxu0 %v876_v34 }
  0x85   : > { %805 = vmatprep.subr.bf16.mxu0 %v877_v35 }
  0x88   : > { %806 = vmatpush3.bf16.msra.mxu0 %v878_v38 }
  0x89   : > { %807 = vmatprep.subr.bf16.mxu0 %v879_v39 }
  0x8c   : > { %808 = vmatpush3.bf16.msra.mxu0 %v880_v40 }
  0x8d   : > { %809 = vmatprep.subr.bf16.mxu0 %v881_v41 }
  0x90   : > { %810 = vmatpush3.bf16.msra.mxu0 %v882_v42 }
  0x93   : > { %649 = vmatmul.mubr.bf16.vlgmr.msra.gmra.mrb[0].mxu0 %v770_v43 }
  0x94   : > { %898 = shalt.err (!%p895_p10)
}
  0x95   : > { %s899_s15 = scalar_lea.hbm %s1252_s4, 256 }
  0x96   : > { %p900_p11 = scmp.ne.s32.totalorder %s1252_s4, %s899_s15  ;;  %p905_p0 = scmp.lt.u32.totalorder %s899_s15, %s1252_s4 }
  0x98   : > { %p901_p12 = pnand %p900_p11, %p148_p3 }
  0x9a   : > { %p902_p13 = pneg %p901_p12 }
  0x9c   : > { %p907_p1 = pnand %p905_p0, %p902_p13 }
  0x9e   : > { %910 = shalt.err (!%p907_p1)
}
  0x9f   : > { %818 = dma.vmem_to_hbm [thread:$0]  (%p148_p3), %s670_s10, 256, %s1252_s4, [#allocation5]  }
  0xa0   : > { %s790_s7 = sshll.u32 %s1032_s22, 7  ;;  %s682_s8 = sshll.u32 %s1145_s16, 4  ;;  %s1201_s8 = int_to_ptr.vmem [resolvable:$true] %s682_s8 }
  0xa1   : > { %s1199_s13 = scalar_lea.hbm %s1253_s5, %s790_s7  ;;  %s658_s14 = scalar_lea.sflag [#allocation7], %s1139_s12 }
  0xa2   : > { %s911_s10 = scalar_lea.vmem %s1201_s8, 128  ;;  %s980_s15 = smov [#allocation6]  }
  0xa3   : > { %p912_p2 = scmp.ne.s32.totalorder %s1201_s8, %s911_s10  ;;  %s915_s17 = sshll.u32 %s980_s15, 4  ;;  %s916_s17 = int_to_ptr.vmem [resolvable:$false] %s915_s17 }
  0xa4   : > { %s917_s23 = scalar_lea.vmem %s916_s17, 256  ;;  %p918_p7 = scmp.lt.s32.totalorder %s1201_s8, %s916_s17 }
  0xa5   : > { %p913_p4 = pnand %p912_p2, %p1052_p6  ;;  %p919_p10 = scmp.lt.s32.totalorder %s917_s23, %s911_s10 }
  0xa7   : > { %p914_p5 = pneg %p913_p4  ;;  %p920_p11 = por %p919_p10, %p918_p7 }
  0xa9   : > { %p921_p12 = pnand %p920_p11, %p914_p5 }
 0x166   : > { %v811_v44 = vpop.f32.mrb[0].mxu0 }
 0x167   : > { %v812_v45 = vpop.f32.mrb[1].mxu0 }
 0x168   : > { %v813_v46 = vadd.f32 %v812_v45, %v811_v44  ;;  %v814_v47 = vpop.f32.mrb[2].mxu0 }
 0x169   : > { %v815_v48 = vpop.f32.mrb[3].mxu0 }
 0x16a   : > { %656 = vst [vmem:[%s1145_s16] sm:$0xff] %v813_v46 }
 0x16b   : > { %924 = shalt.err (!%p921_p12)
}
 0x16c   : > { %s925_s12 = scalar_lea.hbm %s1199_s13, 128  ;;  %s929_s26 = scalar_lea.hbm %s1253_s5, 256 }
 0x16d   : > { %p926_p13 = scmp.ne.s32.totalorder %s1199_s13, %s925_s12  ;;  %p930_p2 = scmp.lt.u32.totalorder %s1199_s13, %s1253_s5 }
 0x16e   : > { %p931_p4 = scmp.lt.u32.totalorder %s929_s26, %s925_s12  ;;  %p933_p7 = scmp.lt.u32.totalorder %s925_s12, %s1199_s13 }
 0x16f   : > { %p927_p0 = pnand %p926_p13, %p1052_p6 }
 0x170   : > { %p932_p5 = por %p931_p4, %p930_p2 }
 0x171   : > { %p928_p1 = pneg %p927_p0 }
 0x172   : > { %p934_p10 = por %p933_p7, %p932_p5 }
 0x174   : > { %p935_p11 = pnand %p934_p10, %p928_p1 }
 0x176   : > { %938 = shalt.err (!%p935_p11)
}
 0x177   : > { %819 = dma.vmem_to_hbm [thread:$0]  (%p1052_p6), %s1201_s8, 128, %s1199_s13, %s658_s14  }
 0x178   : > { %956 = dma.done.wait (%p148_p3), [#allocation5], 256  }
 0x179   : > { %958 = vsyncadd (%p148_p3), [#allocation5], 4294967040 }
 0x17a PF: > { %s698_s7 = sand.u32 1, %s965_s18   ;;  %p824_p12 = pnand %p762_p9, %p1056_p8 }
 0x17b   : > { %s699_s9 = scalar_lea.sflag [#allocation7], %s698_s7 }
 0x17c   : > { %960 = dma.done.wait (!%p824_p12), %s699_s9, 128  }
 0x17d   : > { %962 = vsyncadd (!%p824_p12), %s699_s9, 4294967168  ;;  %p17_p6 = scmp.ge.s32.totalorder %s1036_s24, 4   ;;  %s1256_s18 = smov %s969_s19 }
 0x17e   : > { %s1257_s19 = smov %s973_s20  ;;  %s1258_s20 = smov %s1048_s27 }
 0x17f   : > { %s1259_s21 = smov %s1036_s24  ;;  %19 = sbr.rel (!%p17_p6) target bundleno = 4 (0x4), region = 130 }
 0x186   :  { %704 = vsyncpa [#allocation5], 1 }
 0x187   :  { %706 = vsyncpa [#allocation5 + $0x1], 1 }
 0x188   :  { %707 = vsyncpa [#allocation7], 1 }
 0x189   :  { %709 = vsyncpa [#allocation7 + $0x1], 1 }

</bundles_post_ra>
